<compile_context>
chip_gen: v6e
topology: v6e:2x2x1
jax: 0.10.0
libtpu: 0.0.40
codegen_flags: <defaults>
</compile_context>

<pallas_src>
import functools

import jax
import jax.numpy as jnp
from jax import lax
from jax.experimental import pallas as pl
from jax.experimental.pallas import tpu as pltpu


def _round_up(x, m):
    return ((x + m - 1) // m) * m


def _vmem_capacity_bytes():
    """Physical VMEM of the local TPU (64 MiB on v7x, 128 MiB on v5e/v6e)."""
    try:
        cap = getattr(pltpu.get_tpu_info(), "vmem_capacity_bytes", None)
        if cap:
            return int(cap)
    except Exception:
        pass
    return 64 * 1024 * 1024  # conservative (v7x) fallback


# --------------------------- phase 1: row cosine ----------------------------

def _cosine_kernel(a_ref, b_ref, cos_ref, *, scale):
    """Per-row scaled cosine similarity for one (TR, D) row tile."""
    a = a_ref[...].astype(jnp.float32)
    b = b_ref[...].astype(jnp.float32)
    dot = jnp.sum(a * b, axis=-1, keepdims=True)          # (TR, 1)
    aa = jnp.sum(a * a, axis=-1, keepdims=True)
    bb = jnp.sum(b * b, axis=-1, keepdims=True)
    # rsqrt(max(ss, eps^2)) == 1 / max(sqrt(ss), eps)   (eps = 1e-8, F.normalize)
    eps2 = jnp.float32(1e-16)
    inv = lax.rsqrt(jnp.maximum(aa, eps2)) * lax.rsqrt(jnp.maximum(bb, eps2))
    cos_ref[...] = dot * inv * jnp.float32(scale)


# ---------------- phase 2: masked pairwise exp-sum (fixed shift) ------------

def _pairwise_sum_kernel(cos_cm_ref, cos_r_ref, lab_c_ref, lab_r_ref, acc_ref):
    """One (TR, TC) tile of  sum_ij [lab_i < lab_j] * exp(cos_i - cos_j - M).

    The shift M is pre-folded into cos_cm (= cos - M) by the wrapper, so the
    accumulation is commutative: no online max, no scalar SMEM carry.  The
    per-row-tile accumulator is the (8, TC) output block itself, resident in
    VMEM across the whole column axis; the final collapse happens once in the
    wrapper.
    """
    j = pl.program_id(1)

    @pl.when(j == 0)
    def _():
        acc_ref[...] = jnp.zeros_like(acc_ref)

    keep = lab_c_ref[...] < lab_r_ref[...]             # (TR, TC) bool
    shifted = cos_cm_ref[...] - cos_r_ref[...]         # (cos_i - M) - cos_j
    x = jnp.where(keep, shifted, jnp.float32(-1e30))   # single select
    e = jnp.exp(x)                                     # masked lanes -> 0.0
    tr, tc = e.shape
    # Fold TR rows onto 8 sublanes with pure VALU adds (no per-tile XLU /
    # scalar reduce); accumulate into the resident output block.
    part = e.reshape(tr // 8, 8, tc).sum(axis=0)       # (8, TC)
    acc_ref[...] += part


def cosine_circle_loss(emb_a, emb_b, labels, scale=20.0):
    """emb_a, emb_b: (N, D); labels: (N,). Returns scalar f32 loss."""
    n, d = emb_a.shape
    itemsize = jnp.dtype(emb_a.dtype).itemsize
    vmem_cap = _vmem_capacity_bytes()
    vmem_limit = int(min(vmem_cap * 3 // 4, 100 * 1024 * 1024))

    # --- wrapper-side layout plumbing --------------------------------------
    # Lane-dense embedding dim (zero padding leaves norms / dots unchanged).
    d_pad = _round_up(d, 128)
    if d_pad != d:
        emb_a = jnp.pad(emb_a, ((0, 0), (0, d_pad - d)))
        emb_b = jnp.pad(emb_b, ((0, 0), (0, d_pad - d)))

    # Row padding / tiling.  n_pad is always a multiple of 128 so every
    # phase-2 tile is lane-dense; batches above 1024 rows are padded to a
    # multiple of 512 and tiled with (512, <=2048) blocks.
    if n <= 1024:
        n_pad = max(_round_up(n, 128), 128)
        tr2 = tc = n_pad
    else:
        n_pad = _round_up(n, 512)
        tr2 = 512
        tc = 512
        for t in range(2048, 511, -128):
            if n_pad % t == 0:
                tc = t
                break

    if n_pad != n:
        emb_a = jnp.pad(emb_a, ((0, n_pad - n), (0, 0)))
        emb_b = jnp.pad(emb_b, ((0, n_pad - n), (0, 0)))

    lab = labels.astype(jnp.float32).reshape(n)
    # Padded entries can never satisfy  label_i < label_j  (inf < x is False,
    # x < -inf is False), so padded pairs contribute nothing.
    lab_c = jnp.pad(lab, (0, n_pad - n), constant_values=jnp.inf).reshape(n_pad, 1)
    lab_r = jnp.pad(lab, (0, n_pad - n), constant_values=-jnp.inf).reshape(1, n_pad)

    # Phase-1 row tile: cap the double-buffered a/b tiles *in f32 terms* (the
    # kernel upcasts to f32) at ~1/3 of physical VMEM.  128-MiB parts
    # (v5e/v6e) keep large tiles; 64-MiB v7x shrinks as needed.
    tr1 = min(n_pad, 1024)
    while n_pad % tr1 != 0:
        tr1 -= 128                      # n_pad is a multiple of 128 -> terminates
    p1_budget = vmem_cap // 3
    while tr1 > 128 and 4 * tr1 * d_pad * 4 > p1_budget:
        tr1 //= 2

    # --- phase 1: per-row scaled cosine ------------------------------------
    cos = pl.pallas_call(
        functools.partial(_cosine_kernel, scale=float(scale)),
        out_shape=jax.ShapeDtypeStruct((n_pad, 1), jnp.float32),
        grid=(n_pad // tr1,),
        in_specs=[
            pl.BlockSpec((tr1, d_pad), lambda i: (i, 0)),
            pl.BlockSpec((tr1, d_pad), lambda i: (i, 0)),
        ],
        out_specs=pl.BlockSpec((tr1, 1), lambda i: (i, 0)),
        compiler_params=pltpu.CompilerParams(
            dimension_semantics=("parallel",),          # shards rows across TCs
            vmem_limit_bytes=vmem_limit,
        ),
        cost_estimate=pl.CostEstimate(
            flops=6 * n_pad * d_pad,
            transcendentals=2 * n_pad,
            bytes_accessed=2 * n_pad * d_pad * itemsize + 4 * n_pad,
        ),
    )(emb_a, emb_b)

    # Fixed logsumexp shift: M = max(cos) - min(cos) bounds every pairwise
    # diff, and M >= 0 (padded rows contribute cos == 0), so exp never
    # overflows and the per-tile accumulation is commutative (megacore-safe).
    # With the default scale=20 exponents stay >= -80, well inside f32 range.
    m_shift = jnp.maximum(jnp.max(cos) - jnp.min(cos), jnp.float32(0.0))
    cos_cm = cos - m_shift                   # (n_pad, 1) column, pre-shifted
    cos_r = cos.reshape(1, n_pad)            # lane-dense row view

    n_ti = n_pad // tr2
    n_tj = n_pad // tc

    # --- phase 2: masked pairwise exp-sum -----------------------------------
    # TODO(synk): rows could additionally be label-sorted in the wrapper so
    # fully-masked tiles can be skipped (~2x fewer exps); omitted to keep the
    # wrapper free of data-dependent control flow.
    partials = pl.pallas_call(
        _pairwise_sum_kernel,
        out_shape=jax.ShapeDtypeStruct((8 * n_ti, tc), jnp.float32),
        grid=(n_ti, n_tj),
        in_specs=[
            pl.BlockSpec((tr2, 1), lambda i, j: (i, 0)),
            pl.BlockSpec((1, tc), lambda i, j: (0, j)),
            pl.BlockSpec((tr2, 1), lambda i, j: (i, 0)),
            pl.BlockSpec((1, tc), lambda i, j: (0, j)),
        ],
        out_specs=pl.BlockSpec((8, tc), lambda i, j: (i, 0)),
        compiler_params=pltpu.CompilerParams(
            # Row tiles own independent accumulators -> the row axis shards
            # across v7x's two TensorCores; the column axis is the in-place
            # accumulation axis.
            dimension_semantics=("parallel", "arbitrary"),
            vmem_limit_bytes=vmem_limit,
        ),
        cost_estimate=pl.CostEstimate(
            flops=5 * n_pad * n_pad,
            transcendentals=n_pad * n_pad,
            bytes_accessed=n_ti * n_tj * (tr2 + tc) * 8 + 8 * n_ti * tc * 4,
        ),
    )(cos_cm, cos_r, lab_c, lab_r)

    total = jnp.sum(partials)
    # Reference prepends a single 0.0 before logsumexp -> the exp(-M) term.
    return m_shift + jnp.log(jnp.exp(-m_shift) + total)


def _reference(emb_a, emb_b, labels, scale=20.0):
    eps = 1e-8
    a = emb_a / jnp.maximum(jnp.linalg.norm(emb_a, axis=-1, keepdims=True), eps)
    b = emb_b / jnp.maximum(jnp.linalg.norm(emb_b, axis=-1, keepdims=True), eps)
    cos = jnp.sum(a * b, axis=1) * scale
    diff = cos[:, None] - cos[None, :]
    keep = (labels[:, None] < labels[None, :]).astype(jnp.float32)
    diff = diff - (1.0 - keep) * 1e12
    vals = jnp.concatenate([jnp.zeros((1,), jnp.float32), diff.reshape(-1)])
    return jax.scipy.special.logsumexp(vals)


if __name__ == "__main__":
    key = jax.random.PRNGKey(0)
    k_a, k_b, k_l = jax.random.split(key, 3)

    # Small shape matching the module's forward (a batch of sentence pairs).
    N, D = 8, 32
    emb_a = jax.random.normal(k_a, (N, D), dtype=jnp.float32)
    emb_b = jax.random.normal(k_b, (N, D), dtype=jnp.float32)
    labels = jax.random.uniform(k_l, (N,), dtype=jnp.float32)  # similarity scores

    loss = jax.block_until_ready(cosine_circle_loss(emb_a, emb_b, labels, scale=20.0))
    ref = _reference(emb_a, emb_b, labels, scale=20.0)
    assert jnp.allclose(loss, ref, rtol=1e-5, atol=1e-5), (loss, ref)

    # Medium case exercising row/D padding on the single-tile phase-2 path.
    N2, D2 = 600, 72
    k_a2, k_b2, k_l2 = jax.random.split(jax.random.PRNGKey(1), 3)
    emb_a2 = jax.random.normal(k_a2, (N2, D2), dtype=jnp.float32)
    emb_b2 = jax.random.normal(k_b2, (N2, D2), dtype=jnp.float32)
    labels2 = jax.random.uniform(k_l2, (N2,), dtype=jnp.float32)
    loss2 = jax.block_until_ready(cosine_circle_loss(emb_a2, emb_b2, labels2, scale=20.0))
    ref2 = _reference(emb_a2, emb_b2, labels2, scale=20.0)
    assert jnp.allclose(loss2, ref2, rtol=1e-4, atol=1e-4), (loss2, ref2)

    # Larger case exercising the tiled grid: multiple row tiles (parallel axis,
    # per-tile accumulators) and multiple column tiles (in-place accumulation).
    N3, D3 = 2100, 96
    k_a3, k_b3, k_l3 = jax.random.split(jax.random.PRNGKey(2), 3)
    emb_a3 = jax.random.normal(k_a3, (N3, D3), dtype=jnp.float32)
    emb_b3 = jax.random.normal(k_b3, (N3, D3), dtype=jnp.float32)
    labels3 = jax.random.uniform(k_l3, (N3,), dtype=jnp.float32)
    loss3 = jax.block_until_ready(cosine_circle_loss(emb_a3, emb_b3, labels3, scale=20.0))
    ref3 = _reference(emb_a3, emb_b3, labels3, scale=20.0)
    assert jnp.allclose(loss3, ref3, rtol=1e-4, atol=1e-4), (loss3, ref3)

    print("KERNEL_OK")
</pallas_src>

<mosaic_0001>
module attributes {stable_mosaic.version = 11 : i64} {
  func.func @_cosine_kernel(%arg0: i32, %arg1: memref<128x128xf32, #tpu.memory_space<vmem>>, %arg2: memref<128x128xf32, #tpu.memory_space<vmem>>, %arg3: memref<128x1xf32, #tpu.memory_space<vmem>>) attributes {dimension_semantics = [#tpu.dimension_semantics<parallel>], iteration_bounds = array<i64: 1>, scalar_prefetch = 0 : i64, scratch_operands = 0 : i64, tpu.core_type = #tpu.core_type<tc>, window_params = [{transform_indices = @transform_0, window_bounds = array<i64: 128, 128>}, {transform_indices = @transform_1, window_bounds = array<i64: 128, 128>}, {transform_indices = @transform_2, window_bounds = array<i64: 128, 1>}]} {
    %c0 = arith.constant 0 : index
    %c0_0 = arith.constant 0 : index
    %0 = vector.load %arg1[%c0, %c0_0] : memref<128x128xf32, #tpu.memory_space<vmem>>, vector<128x128xf32>
    %c0_1 = arith.constant 0 : index
    %c0_2 = arith.constant 0 : index
    %1 = vector.load %arg2[%c0_1, %c0_2] : memref<128x128xf32, #tpu.memory_space<vmem>>, vector<128x128xf32>
    %2 = arith.mulf %0, %1 : vector<128x128xf32>
    %cst = arith.constant dense<0.000000e+00> : vector<128xf32>
    %3 = vector.multi_reduction <add>, %2, %cst [1] : vector<128x128xf32> to vector<128xf32>
    %4 = vector.shape_cast %3 : vector<128xf32> to vector<128x1xf32>
    %5 = arith.mulf %0, %0 : vector<128x128xf32>
    %cst_3 = arith.constant dense<0.000000e+00> : vector<128xf32>
    %6 = vector.multi_reduction <add>, %5, %cst_3 [1] : vector<128x128xf32> to vector<128xf32>
    %7 = vector.shape_cast %6 : vector<128xf32> to vector<128x1xf32>
    %8 = arith.mulf %1, %1 : vector<128x128xf32>
    %cst_4 = arith.constant dense<0.000000e+00> : vector<128xf32>
    %9 = vector.multi_reduction <add>, %8, %cst_4 [1] : vector<128x128xf32> to vector<128xf32>
    %10 = vector.shape_cast %9 : vector<128xf32> to vector<128x1xf32>
    %cst_5 = arith.constant 1.000000e-16 : f32
    %11 = vector.broadcast %cst_5 : f32 to vector<128x1xf32>
    %12 = arith.maximumf %7, %11 : vector<128x1xf32>
    %13 = math.rsqrt %12 : vector<128x1xf32>
    %cst_6 = arith.constant 1.000000e-16 : f32
    %14 = vector.broadcast %cst_6 : f32 to vector<128x1xf32>
    %15 = arith.maximumf %10, %14 : vector<128x1xf32>
    %16 = math.rsqrt %15 : vector<128x1xf32>
    %17 = arith.mulf %13, %16 : vector<128x1xf32>
    %18 = arith.mulf %4, %17 : vector<128x1xf32>
    %cst_7 = arith.constant 2.000000e+01 : f32
    %19 = vector.broadcast %cst_7 : f32 to vector<128x1xf32>
    %20 = arith.mulf %18, %19 : vector<128x1xf32>
    %c0_8 = arith.constant 0 : index
    %c0_9 = arith.constant 0 : index
    %21 = vector.load %arg3[%c0_8, %c0_9] : memref<128x1xf32, #tpu.memory_space<vmem>>, vector<128x1xf32>
    tpu.vector_store %arg3[%c0_8, %c0_9], %20 {strides = array<i32>} : memref<128x1xf32, #tpu.memory_space<vmem>>, vector<128x1xf32>,
    return
  }
  func.func @transform_0(%arg0: i32) -> (i32, i32) {
    %c0_i32 = arith.constant 0 : i32
    %c0_i32_0 = arith.constant 0 : i32
    return %arg0, %c0_i32 : i32, i32
  }
  func.func @transform_1(%arg0: i32) -> (i32, i32) {
    %c0_i32 = arith.constant 0 : i32
    %c0_i32_0 = arith.constant 0 : i32
    return %arg0, %c0_i32 : i32, i32
  }
  func.func @transform_2(%arg0: i32) -> (i32, i32) {
    %c0_i32 = arith.constant 0 : i32
    %c0_i32_0 = arith.constant 0 : i32
    return %arg0, %c0_i32 : i32, i32
  }
}

</mosaic_0001>

<bundles_post_ra>
// kernel: tpu_custom_call.1
= control target key start
LH: loop header
LB: loop body
LE: loop exit
PB: predicated region body
PF: predicated region fallthrough
CT: control target
= control target key end

     0   :  { %7 = vsyncpa [#allocation3], 0  ;;  %s651_s0 = inlined_call_operand.hbm [shape: f32[128,128], index: 0, kind: input, shape index: {}]   ;;  %s652_s1 = inlined_call_operand.hbm [shape: f32[128,128], index: 1, kind: input, shape index: {}]   ;;  %s653_s2 = inlined_call_operand.vmem [shape: f32[128,1], index: 2, kind: output, shape index: {}]  }
   0x1   :  { %8 = vsyncpa [#allocation5], 0  ;;  %s462_s9 = smov [#allocation2]  }
   0x2   :  { %s14_s10 = sshll.u32 %s462_s9, 4  ;;  %s15_s10 = int_to_ptr.vmem [resolvable:$true] %s14_s10 }
   0x3   :  { %s426_s11 = scalar_lea.vmem %s15_s10, 2048  ;;  %p431_p1 = scmp.lt.s32.totalorder %s15_s10, %s15_s10 }
   0x4   :  { %p427_p0 = scmp.ne.s32.totalorder %s15_s10, %s426_s11  ;;  %p432_p2 = scmp.lt.s32.totalorder %s426_s11, %s426_s11 }
   0x6   :  { %p433_p3 = por %p432_p2, %p431_p1 }
   0x8   :  { %p434_p4 = pnand %p433_p3, %p427_p0 }
   0xa   :  { %437 = shalt.err (!%p434_p4)
}
   0xb   :  { %s463_s12 = smov 128   ;;  %s464_s13 = smov 8  }
   0xc   :  { %20 = dma.hbm_to_vmem [thread:$0]  %s651_s0, 2048, %s15_s10, [#allocation3], %s463_s12, %s463_s12, %s464_s13  }
   0xd   :  { %s465_s16 = smov [#allocation4]  }
   0xe   :  { %s26_s17 = sshll.u32 %s465_s16, 4  ;;  %s27_s17 = int_to_ptr.vmem [resolvable:$true] %s26_s17 }
   0xf   :  { %s446_s18 = scalar_lea.vmem %s27_s17, 2048  ;;  %p451_p6 = scmp.lt.s32.totalorder %s27_s17, %s27_s17 }
  0x10   :  { %p447_p5 = scmp.ne.s32.totalorder %s27_s17, %s446_s18  ;;  %p452_p7 = scmp.lt.s32.totalorder %s446_s18, %s446_s18 }
  0x12   :  { %p453_p8 = por %p452_p7, %p451_p6 }
  0x14   :  { %p454_p9 = pnand %p453_p8, %p447_p5 }
  0x16   :  { %457 = shalt.err (!%p454_p9)
}
  0x17   :  { %32 = dma.hbm_to_vmem [thread:$0]  %s652_s1, 2048, %s27_s17, [#allocation5], %s463_s12, %s463_s12, %s464_s13  }
  0x18   :  { %458 = dma.done.wait [#allocation3], 2048  }
  0x19   :  { %459 = vsyncadd [#allocation3], 4294965248 }
  0x1a   :  { %460 = dma.done.wait [#allocation5], 2048  }
  0x1b   :  { %461 = vsyncadd [#allocation5], 4294965248  ;;  %v39_v0 = vld [vmem:[#allocation2] sm:$0xff]  ;;  %v40_v2 = vld [vmem:[#allocation2 + $0x8] sm:$0xff]  ;;  %vm327_vm0 = vcmask 7168  }
  0x1c   :  { %v55_v1 = vld [vmem:[#allocation4] sm:$0xff]  ;;  %v119_v3 = vmul.f32 %v39_v0, %v39_v0  ;;  %v56_v5 = vld [vmem:[#allocation4 + $0x8] sm:$0xff]  ;;  %v120_v6 = vmul.f32 %v40_v2, %v40_v2  ;;  %v487_v8 = vld [vmem:[#allocation2 + $0x18] sm:$0xff] }
  0x1d   :  { %v71_v4 = vmul.f32 %v55_v1, %v39_v0  ;;  %v72_v7 = vmul.f32 %v56_v5, %v40_v2  ;;  %v489_v9 = vld [vmem:[#allocation2 + $0x10] sm:$0xff]  ;;  %v122_v10 = vmul.f32 %v487_v8, %v487_v8  ;;  %v495_v12 = vld [vmem:[#allocation2 + $0x28] sm:$0xff]  ;;  %v497_v13 = vld [vmem:[#allocation2 + $0x20] sm:$0xff]  ;;  %v168_v36 = vmul.f32 %v56_v5, %v56_v5 }
  0x1e   :  { %135 = vadd.xlane.f32.xlu1 %v119_v3  ;;  %v121_v11 = vmul.f32 %v489_v9, %v489_v9  ;;  %v124_v14 = vmul.f32 %v495_v12, %v495_v12  ;;  %v123_v15 = vmul.f32 %v497_v13, %v497_v13  ;;  %v503_v16 = vld [vmem:[#allocation2 + $0x38] sm:$0xff]  ;;  %v505_v17 = vld [vmem:[#allocation2 + $0x30] sm:$0xff]  ;;  %v511_v20 = vld [vmem:[#allocation2 + $0x48] sm:$0xff]  ;;  %v167_v37 = vmul.f32 %v55_v1, %v55_v1 }
  0x1f   :  { %87 = vadd.xlane.f32.xlu0 %v71_v4  ;;  %v126_v18 = vmul.f32 %v503_v16, %v503_v16  ;;  %v125_v19 = vmul.f32 %v505_v17, %v505_v17  ;;  %v513_v21 = vld [vmem:[#allocation2 + $0x40] sm:$0xff]  ;;  %v128_v22 = vmul.f32 %v511_v20, %v511_v20  ;;  %v519_v24 = vld [vmem:[#allocation2 + $0x58] sm:$0xff]  ;;  %v521_v25 = vld [vmem:[#allocation2 + $0x50] sm:$0xff] }
  0x20   :  { %v127_v23 = vmul.f32 %v513_v21, %v513_v21  ;;  %v130_v26 = vmul.f32 %v519_v24, %v519_v24  ;;  %v129_v27 = vmul.f32 %v521_v25, %v521_v25  ;;  %v527_v28 = vld [vmem:[#allocation2 + $0x68] sm:$0xff]  ;;  %v529_v29 = vld [vmem:[#allocation2 + $0x60] sm:$0xff]  ;;  %v535_v32 = vld [vmem:[#allocation2 + $0x78] sm:$0xff] }
  0x21   :  { %v132_v30 = vmul.f32 %v527_v28, %v527_v28  ;;  %v131_v31 = vmul.f32 %v529_v29, %v529_v29  ;;  %v537_v33 = vld [vmem:[#allocation2 + $0x70] sm:$0xff]  ;;  %v134_v34 = vmul.f32 %v535_v32, %v535_v32  ;;  %v58_v38 = vld [vmem:[#allocation4 + $0x18] sm:$0xff]  ;;  %v60_v42 = vld [vmem:[#allocation4 + $0x28] sm:$0xff] }
  0x22   :  { %137 = vadd.xlane.f32.xlu1 %v120_v6  ;;  %v133_v35 = vmul.f32 %v537_v33, %v537_v33  ;;  %v57_v39 = vld [vmem:[#allocation4 + $0x10] sm:$0xff]  ;;  %v170_v40 = vmul.f32 %v58_v38, %v58_v38  ;;  %v59_v43 = vld [vmem:[#allocation4 + $0x20] sm:$0xff]  ;;  %v172_v44 = vmul.f32 %v60_v42, %v60_v42  ;;  %v62_v46 = vld [vmem:[#allocation4 + $0x38] sm:$0xff]  ;;  %v74_v2 = vmul.f32 %v58_v38, %v487_v8 }
  0x23   :  { %89 = vadd.xlane.f32.xlu0 %v72_v7  ;;  %v169_v41 = vmul.f32 %v57_v39, %v57_v39  ;;  %v171_v45 = vmul.f32 %v59_v43, %v59_v43  ;;  %v61_v47 = vld [vmem:[#allocation4 + $0x30] sm:$0xff]  ;;  %v174_v48 = vmul.f32 %v62_v46, %v62_v46  ;;  %v64_v50 = vld [vmem:[#allocation4 + $0x48] sm:$0xff]  ;;  %v63_v51 = vld [vmem:[#allocation4 + $0x40] sm:$0xff]  ;;  %v73_v3 = vmul.f32 %v57_v39, %v489_v9 }
  0x24   :  { %v173_v49 = vmul.f32 %v61_v47, %v61_v47  ;;  %v176_v52 = vmul.f32 %v64_v50, %v64_v50  ;;  %v175_v53 = vmul.f32 %v63_v51, %v63_v51  ;;  %v66_v54 = vld [vmem:[#allocation4 + $0x58] sm:$0xff]  ;;  %v65_v55 = vld [vmem:[#allocation4 + $0x50] sm:$0xff]  ;;  %v68_v58 = vld [vmem:[#allocation4 + $0x68] sm:$0xff]  ;;  %v76_v4 = vmul.f32 %v60_v42, %v495_v12 }
  0x25   :  { %v178_v56 = vmul.f32 %v66_v54, %v66_v54  ;;  %v177_v57 = vmul.f32 %v65_v55, %v65_v55  ;;  %v67_v59 = vld [vmem:[#allocation4 + $0x60] sm:$0xff]  ;;  %v180_v60 = vmul.f32 %v68_v58, %v68_v58  ;;  %v70_v62 = vld [vmem:[#allocation4 + $0x78] sm:$0xff]  ;;  %v69_v63 = vld [vmem:[#allocation4 + $0x70] sm:$0xff]  ;;  %v75_v5 = vmul.f32 %v59_v43, %v497_v13 }
  0x26   :  { %141 = vadd.xlane.f32.xlu1 %v122_v10  ;;  %v179_v61 = vmul.f32 %v67_v59, %v67_v59  ;;  %v182_v0 = vmul.f32 %v70_v62, %v70_v62  ;;  %v181_v1 = vmul.f32 %v69_v63, %v69_v63  ;;  %v78_v6 = vmul.f32 %v62_v46, %v503_v16 }
  0x27   :  { %139 = vadd.xlane.f32.xlu0 %v121_v11  ;;  %v77_v7 = vmul.f32 %v61_v47, %v505_v17  ;;  %v80_v10 = vmul.f32 %v64_v50, %v511_v20  ;;  %v79_v8 = vmul.f32 %v63_v51, %v513_v21  ;;  %v82_v9 = vmul.f32 %v66_v54, %v519_v24 }
  0x28   :  { %v81_v11 = vmul.f32 %v65_v55, %v521_v25  ;;  %v84_v12 = vmul.f32 %v68_v58, %v527_v28  ;;  %v83_v13 = vmul.f32 %v67_v59, %v529_v29 }
  0x2a   :  { %145 = vadd.xlane.f32.xlu1 %v124_v14  ;;  %v86_v14 = vmul.f32 %v70_v62, %v535_v32 }
  0x2b   :  { %143 = vadd.xlane.f32.xlu0 %v123_v15  ;;  %v85_v15 = vmul.f32 %v69_v63, %v537_v33 }
  0x2e   :  { %149 = vadd.xlane.f32.xlu1 %v126_v18 }
  0x2f   :  { %147 = vadd.xlane.f32.xlu0 %v125_v19 }
  0x32   :  { %153 = vadd.xlane.f32.xlu1 %v128_v22 }
  0x33   :  { %151 = vadd.xlane.f32.xlu0 %v127_v23 }
  0x36   :  { %157 = vadd.xlane.f32.xlu1 %v130_v26 }
  0x37   :  { %155 = vadd.xlane.f32.xlu0 %v129_v27 }
  0x3a   :  { %161 = vadd.xlane.f32.xlu1 %v132_v30 }
  0x3b   :  { %159 = vadd.xlane.f32.xlu0 %v131_v31 }
  0x3e   :  { %165 = vadd.xlane.f32.xlu1 %v134_v34 }
  0x3f   :  { %163 = vadd.xlane.f32.xlu0 %v133_v35 }
  0x42   :  { %185 = vadd.xlane.f32.xlu1 %v168_v36 }
  0x43   :  { %183 = vadd.xlane.f32.xlu0 %v167_v37 }
  0x46   :  { %189 = vadd.xlane.f32.xlu1 %v170_v40 }
  0x47   :  { %187 = vadd.xlane.f32.xlu0 %v169_v41 }
  0x4a   :  { %193 = vadd.xlane.f32.xlu1 %v172_v44 }
  0x4b   :  { %191 = vadd.xlane.f32.xlu0 %v171_v45 }
  0x4e   :  { %197 = vadd.xlane.f32.xlu1 %v174_v48 }
  0x4f   :  { %195 = vadd.xlane.f32.xlu0 %v173_v49 }
  0x52   :  { %201 = vadd.xlane.f32.xlu1 %v176_v52 }
  0x53   :  { %199 = vadd.xlane.f32.xlu0 %v175_v53 }
  0x56   :  { %205 = vadd.xlane.f32.xlu1 %v178_v56 }
  0x57   :  { %203 = vadd.xlane.f32.xlu0 %v177_v57 }
  0x5a   :  { %209 = vadd.xlane.f32.xlu1 %v180_v60 }
  0x5b   :  { %207 = vadd.xlane.f32.xlu0 %v179_v61 }
  0x5e   :  { %213 = vadd.xlane.f32.xlu1 %v182_v0 }
  0x5f   :  { %211 = vadd.xlane.f32.xlu0 %v181_v1 }
  0x62   :  { %93 = vadd.xlane.f32.xlu1 %v74_v2 }
  0x63   :  { %91 = vadd.xlane.f32.xlu0 %v73_v3 }
  0x66   :  { %97 = vadd.xlane.f32.xlu1 %v76_v4 }
  0x67   :  { %95 = vadd.xlane.f32.xlu0 %v75_v5 }
  0x6a   :  { %101 = vadd.xlane.f32.xlu1 %v78_v6 }
  0x6b   :  { %99 = vadd.xlane.f32.xlu0 %v77_v7 }
  0x6e   :  { %105 = vadd.xlane.f32.xlu1 %v80_v10 }
  0x6f   :  { %103 = vadd.xlane.f32.xlu0 %v79_v8 }
  0x72   :  { %109 = vadd.xlane.f32.xlu1 %v82_v9 }
  0x73   :  { %107 = vadd.xlane.f32.xlu0 %v81_v11 }
  0x76   :  { %113 = vadd.xlane.f32.xlu1 %v84_v12 }
  0x77   :  { %111 = vadd.xlane.f32.xlu0 %v83_v13 }
  0x7a   :  { %117 = vadd.xlane.f32.xlu1 %v86_v14 }
  0x7b   :  { %115 = vadd.xlane.f32.xlu0 %v85_v15 }
  0xa7   :  { %v136_v16 = vpop.xlane.xlu1 %135 }
  0xa8   :  { %v88_v17 = vpop.xlane.xlu0 %87  ;;  %v215_v34 = vmax.f32 %v136_v16, 1e-16 }
  0xaa   :  { %354 = vrsqrt.f32 %v215_v34 }
  0xab   :  { %v138_v18 = vpop.xlane.xlu1 %137 }
  0xac   :  { %v90_v19 = vpop.xlane.xlu0 %89  ;;  %v216_v35 = vmax.f32 %v138_v18, 1e-16 }
  0xae   :  { %356 = vrsqrt.f32 %v216_v35 }
  0xaf   :  { %v142_v20 = vpop.xlane.xlu1 %141 }
  0xb0   :  { %v140_v21 = vpop.xlane.xlu0 %139  ;;  %v218_v44 = vmax.f32 %v142_v20, 1e-16 }
  0xb1   :  { %v217_v47 = vmax.f32 %v140_v21, 1e-16 }
  0xb3   :  { %v146_v22 = vpop.xlane.xlu1 %145 }
  0xb4   :  { %v144_v23 = vpop.xlane.xlu0 %143  ;;  %v220_v54 = vmax.f32 %v146_v22, 1e-16 }
  0xb5   :  { %v219_v56 = vmax.f32 %v144_v23, 1e-16 }
  0xb7   :  { %v557_v24 = vpop.xlane.xlu1 %149  ;;  %v355_v51 = vpop.eup %354 }
  0xb8   :  { %v559_v25 = vpop.xlane.xlu0 %147  ;;  %v222_v1 = vmax.f32 %v557_v24, 1e-16 }
  0xb9   :  { %v221_v5 = vmax.f32 %v559_v25, 1e-16 }
  0xbb   :  { %v561_v26 = vpop.xlane.xlu1 %153  ;;  %v357_v53 = vpop.eup %356 }
  0xbc   :  { %v563_v27 = vpop.xlane.xlu0 %151  ;;  %v224_v9 = vmax.f32 %v561_v26, 1e-16 }
  0xbd   :  { %v223_v13 = vmax.f32 %v563_v27, 1e-16 }
  0xbf   :  { %v565_v28 = vpop.xlane.xlu1 %157 }
  0xc0   :  { %v567_v29 = vpop.xlane.xlu0 %155 }
  0xc1   :  { %v225_v23 = vmax.f32 %v567_v29, 1e-16 }
  0xc3   :  { %v569_v30 = vpop.xlane.xlu1 %161 }
  0xc4   :  { %v571_v31 = vpop.xlane.xlu0 %159 }
  0xc7   :  { %v573_v32 = vpop.xlane.xlu1 %165 }
  0xc8   :  { %v575_v33 = vpop.xlane.xlu0 %163 }
  0xcb   :  { %v186_v36 = vpop.xlane.xlu1 %185 }
  0xcc   :  { %v184_v37 = vpop.xlane.xlu0 %183  ;;  %v248_v38 = vmax.f32 %v186_v36, 1e-16 }
  0xcd   :  { %v247_v39 = vmax.f32 %v184_v37, 1e-16  ;;  %v228_v37 = vmax.f32 %v569_v30, 1e-16  ;;  %v230_v30 = vmax.f32 %v573_v32, 1e-16 }
  0xce   :  { %358 = vrsqrt.f32 %v248_v38 }
  0xcf   :  { %360 = vrsqrt.f32 %v247_v39  ;;  %v190_v40 = vpop.xlane.xlu1 %189 }
  0xd0   :  { %v188_v41 = vpop.xlane.xlu0 %187  ;;  %v250_v45 = vmax.f32 %v190_v40, 1e-16  ;;  %362 = vrsqrt.f32 %v218_v44  ;;  %v227_v40 = vmax.f32 %v571_v31, 1e-16  ;;  %v229_v31 = vmax.f32 %v575_v33, 1e-16 }
  0xd1   :  { %v249_v46 = vmax.f32 %v188_v41, 1e-16 }
  0xd2   :  { %364 = vrsqrt.f32 %v250_v45 }
  0xd3   :  { %v194_v42 = vpop.xlane.xlu1 %193  ;;  %366 = vrsqrt.f32 %v249_v46 }
  0xd4   :  { %v192_v43 = vpop.xlane.xlu0 %191  ;;  %v252_v50 = vmax.f32 %v194_v42, 1e-16  ;;  %368 = vrsqrt.f32 %v217_v47 }
  0xd5   :  { %v251_v52 = vmax.f32 %v192_v43, 1e-16 }
  0xd6   :  { %370 = vrsqrt.f32 %v252_v50 }
  0xd7   :  { %v198_v48 = vpop.xlane.xlu1 %197  ;;  %372 = vrsqrt.f32 %v251_v52 }
  0xd8   :  { %v196_v49 = vpop.xlane.xlu0 %195  ;;  %v254_v62 = vmax.f32 %v198_v48, 1e-16  ;;  %374 = vrsqrt.f32 %v220_v54 }
  0xd9   :  { %v253_v0 = vmax.f32 %v196_v49, 1e-16  ;;  %376 = vrsqrt.f32 %v219_v56 }
  0xda   :  { %378 = vrsqrt.f32 %v254_v62 }
  0xdb   :  { %v359_v55 = vpop.eup %358  ;;  %v202_v57 = vpop.xlane.xlu1 %201  ;;  %380 = vrsqrt.f32 %v253_v0 }
  0xdc   :  { %v200_v58 = vpop.xlane.xlu0 %199  ;;  %v361_v59 = vpop.eup %360  ;;  %v280_v60 = vmul.f32 %v359_v55, %v357_v53  ;;  %v256_v10 = vmax.f32 %v202_v57, 1e-16  ;;  %382 = vrsqrt.f32 %v222_v1 }
  0xdd   :  { %v279_v61 = vmul.f32 %v361_v59, %v355_v51  ;;  %v255_v8 = vmax.f32 %v200_v58, 1e-16  ;;  %384 = vrsqrt.f32 %v221_v5  ;;  %v363_v14 = vpop.eup %362 }
  0xde   :  { %v296_v63 = vmul.f32 %v280_v60, %v90_v19  ;;  %386 = vrsqrt.f32 %v256_v10  ;;  %v226_v19 = vmax.f32 %v565_v28, 1e-16 }
  0xdf   :  { %v295_v2 = vmul.f32 %v279_v61, %v88_v17  ;;  %v206_v3 = vpop.xlane.xlu1 %205  ;;  %v365_v16 = vpop.eup %364  ;;  %388 = vrsqrt.f32 %v255_v8 }
  0xe0   :  { %v204_v4 = vpop.xlane.xlu0 %203  ;;  %v312_v6 = vmul.f32 20.0, %v296_v63  ;;  %v258_v15 = vmax.f32 %v206_v3, 1e-16  ;;  %v367_v18 = vpop.eup %366  ;;  %390 = vrsqrt.f32 %v224_v9  ;;  %v282_v34 = vmul.f32 %v365_v16, %v363_v14 }
  0xe1   :  { %v311_v7 = vmul.f32 20.0, %v295_v2  ;;  %v257_v17 = vmax.f32 %v204_v4, 1e-16  ;;  %v369_v22 = vpop.eup %368  ;;  %392 = vrsqrt.f32 %v223_v13 }
  0xe2   :  { %329 = vst.msk [vmem:[%s653_s2 + $0x8] sm:$0xff] %vm327_vm0, %v312_v6  ;;  %394 = vrsqrt.f32 %v258_v15  ;;  %v281_v35 = vmul.f32 %v369_v22, %v367_v18 }
  0xe3   :  { %328 = vst.msk [vmem:[%s653_s2] sm:$0xff] %vm327_vm0, %v311_v7  ;;  %v210_v11 = vpop.xlane.xlu1 %209  ;;  %v371_v24 = vpop.eup %370  ;;  %396 = vrsqrt.f32 %v257_v17 }
  0xe4   :  { %v208_v12 = vpop.xlane.xlu0 %207  ;;  %v260_v25 = vmax.f32 %v210_v11, 1e-16  ;;  %v373_v26 = vpop.eup %372  ;;  %398 = vrsqrt.f32 %v226_v19 }
  0xe5   :  { %v259_v27 = vmax.f32 %v208_v12, 1e-16  ;;  %v375_v36 = vpop.eup %374  ;;  %400 = vrsqrt.f32 %v225_v23 }
  0xe6   :  { %v377_v39 = vpop.eup %376  ;;  %402 = vrsqrt.f32 %v260_v25  ;;  %v284_v43 = vmul.f32 %v375_v36, %v371_v24 }
  0xe7   :  { %v214_v20 = vpop.xlane.xlu1 %213  ;;  %v283_v44 = vmul.f32 %v377_v39, %v373_v26  ;;  %v379_v45 = vpop.eup %378  ;;  %404 = vrsqrt.f32 %v259_v27 }
  0xe8   :  { %v212_v21 = vpop.xlane.xlu0 %211  ;;  %v262_v42 = vmax.f32 %v214_v20, 1e-16  ;;  %v381_v49 = vpop.eup %380  ;;  %406 = vrsqrt.f32 %v228_v37 }
  0xe9   :  { %v261_v46 = vmax.f32 %v212_v21, 1e-16  ;;  %v383_v52 = vpop.eup %382  ;;  %408 = vrsqrt.f32 %v227_v40 }
  0xea   :  { %v385_v55 = vpop.eup %384  ;;  %410 = vrsqrt.f32 %v262_v42  ;;  %v286_v32 = vmul.f32 %v383_v52, %v379_v45 }
  0xeb   :  { %v94_v38 = vpop.xlane.xlu1 %93  ;;  %v387_v56 = vpop.eup %386  ;;  %412 = vrsqrt.f32 %v261_v46  ;;  %v285_v33 = vmul.f32 %v385_v55, %v381_v49 }
  0xec   :  { %v92_v28 = vpop.xlane.xlu0 %91  ;;  %v298_v41 = vmul.f32 %v282_v34, %v94_v38  ;;  %v389_v59 = vpop.eup %388  ;;  %414 = vrsqrt.f32 %v230_v30 }
  0xed   :  { %v297_v29 = vmul.f32 %v281_v35, %v92_v28  ;;  %v391_v62 = vpop.eup %390  ;;  %416 = vrsqrt.f32 %v229_v31 }
  0xee   :  { %v314_v47 = vmul.f32 20.0, %v298_v41  ;;  %v393_v1 = vpop.eup %392  ;;  %v288_v5 = vmul.f32 %v391_v62, %v387_v56 }
  0xef   :  { %v313_v48 = vmul.f32 20.0, %v297_v29  ;;  %v98_v50 = vpop.xlane.xlu1 %97  ;;  %v395_v2 = vpop.eup %394  ;;  %v287_v6 = vmul.f32 %v393_v1, %v389_v59 }
  0xf0   :  { %v96_v51 = vpop.xlane.xlu0 %95  ;;  %331 = vst.msk [vmem:[%s653_s2 + $0x18] sm:$0xff] %vm327_vm0, %v314_v47  ;;  %v300_v53 = vmul.f32 %v284_v43, %v98_v50  ;;  %v397_v7 = vpop.eup %396 }
  0xf1   :  { %330 = vst.msk [vmem:[%s653_s2 + $0x10] sm:$0xff] %vm327_vm0, %v313_v48  ;;  %v299_v54 = vmul.f32 %v283_v44, %v96_v51  ;;  %v399_v9 = vpop.eup %398 }
  0xf2   :  { %v316_v57 = vmul.f32 20.0, %v300_v53  ;;  %v401_v13 = vpop.eup %400  ;;  %v290_v17 = vmul.f32 %v399_v9, %v395_v2 }
  0xf3   :  { %v315_v58 = vmul.f32 20.0, %v299_v54  ;;  %v102_v60 = vpop.xlane.xlu1 %101  ;;  %v403_v14 = vpop.eup %402  ;;  %v289_v18 = vmul.f32 %v401_v13, %v397_v7 }
  0xf4   :  { %v100_v61 = vpop.xlane.xlu0 %99  ;;  %333 = vst.msk [vmem:[%s653_s2 + $0x28] sm:$0xff] %vm327_vm0, %v316_v57  ;;  %v302_v63 = vmul.f32 %v286_v32, %v102_v60  ;;  %v405_v19 = vpop.eup %404 }
  0xf5   :  { %332 = vst.msk [vmem:[%s653_s2 + $0x20] sm:$0xff] %vm327_vm0, %v315_v58  ;;  %v301_v0 = vmul.f32 %v285_v33, %v100_v61  ;;  %v407_v22 = vpop.eup %406 }
  0xf6   :  { %v318_v3 = vmul.f32 20.0, %v302_v63  ;;  %v409_v25 = vpop.eup %408  ;;  %v292_v35 = vmul.f32 %v407_v22, %v403_v14 }
  0xf7   :  { %v317_v4 = vmul.f32 20.0, %v301_v0  ;;  %v106_v10 = vpop.xlane.xlu1 %105  ;;  %v411_v26 = vpop.eup %410  ;;  %v291_v36 = vmul.f32 %v409_v25, %v405_v19 }
  0xf8   :  { %v104_v8 = vpop.xlane.xlu0 %103  ;;  %335 = vst.msk [vmem:[%s653_s2 + $0x38] sm:$0xff] %vm327_vm0, %v318_v3  ;;  %v304_v11 = vmul.f32 %v288_v5, %v106_v10  ;;  %v413_v37 = vpop.eup %412 }
  0xf9   :  { %334 = vst.msk [vmem:[%s653_s2 + $0x30] sm:$0xff] %vm327_vm0, %v317_v4  ;;  %v303_v12 = vmul.f32 %v287_v6, %v104_v8  ;;  %v415_v39 = vpop.eup %414 }
  0xfa   :  { %v320_v15 = vmul.f32 20.0, %v304_v11  ;;  %v417_v29 = vpop.eup %416  ;;  %v294_v44 = vmul.f32 %v415_v39, %v411_v26 }
  0xfb   :  { %v319_v16 = vmul.f32 20.0, %v303_v12  ;;  %v110_v20 = vpop.xlane.xlu1 %109  ;;  %v293_v45 = vmul.f32 %v417_v29, %v413_v37 }
  0xfc   :  { %v108_v21 = vpop.xlane.xlu0 %107  ;;  %337 = vst.msk [vmem:[%s653_s2 + $0x48] sm:$0xff] %vm327_vm0, %v320_v15  ;;  %v306_v23 = vmul.f32 %v290_v17, %v110_v20 }
  0xfd   :  { %336 = vst.msk [vmem:[%s653_s2 + $0x40] sm:$0xff] %vm327_vm0, %v319_v16  ;;  %v305_v24 = vmul.f32 %v289_v18, %v108_v21 }
  0xfe   :  { %v322_v27 = vmul.f32 20.0, %v306_v23 }
  0xff   :  { %v321_v34 = vmul.f32 20.0, %v305_v24  ;;  %v114_v38 = vpop.xlane.xlu1 %113 }
 0x100   :  { %v112_v28 = vpop.xlane.xlu0 %111  ;;  %339 = vst.msk [vmem:[%s653_s2 + $0x58] sm:$0xff] %vm327_vm0, %v322_v27  ;;  %v308_v40 = vmul.f32 %v292_v35, %v114_v38 }
 0x101   :  { %338 = vst.msk [vmem:[%s653_s2 + $0x50] sm:$0xff] %vm327_vm0, %v321_v34  ;;  %v307_v41 = vmul.f32 %v291_v36, %v112_v28 }
 0x102   :  { %v324_v42 = vmul.f32 20.0, %v308_v40 }
 0x103   :  { %v323_v43 = vmul.f32 20.0, %v307_v41  ;;  %v118_v46 = vpop.xlane.xlu1 %117 }
 0x104   :  { %v116_v47 = vpop.xlane.xlu0 %115  ;;  %341 = vst.msk [vmem:[%s653_s2 + $0x68] sm:$0xff] %vm327_vm0, %v324_v42  ;;  %v310_v48 = vmul.f32 %v294_v44, %v118_v46 }
 0x105   :  { %340 = vst.msk [vmem:[%s653_s2 + $0x60] sm:$0xff] %vm327_vm0, %v323_v43  ;;  %v309_v49 = vmul.f32 %v293_v45, %v116_v47 }
 0x106   :  { %v326_v30 = vmul.f32 20.0, %v310_v48 }
 0x107   :  { %v325_v50 = vmul.f32 20.0, %v309_v49 }
 0x108   :  { %343 = vst.msk [vmem:[%s653_s2 + $0x78] sm:$0xff] %vm327_vm0, %v326_v30 }
 0x109   :  { %342 = vst.msk [vmem:[%s653_s2 + $0x70] sm:$0xff] %vm327_vm0, %v325_v50 }
 0x10a   :  { %348 = vsyncpa [#allocation3], 1 }
 0x10b   :  { %349 = vsyncpa [#allocation5], 1 }

</bundles_post_ra>
